<compile_context>
chip_gen: v6e
topology: v6e:2x2x1
jax: 0.10.0
libtpu: 0.0.40
codegen_flags: <defaults>
</compile_context>

<pallas_src>
import functools

import numpy as np
import jax
import jax.numpy as jnp
from jax.experimental import pallas as pl
from jax.experimental.pallas import tpu as pltpu


# --------------------------------------------------------------------------
# Row layout of the fused reduction output (per (b, f), lane 0 is used)
# --------------------------------------------------------------------------
ROW_MASK_ABS = 0    # sum |YpM - YM|
ROW_YMB = 1         # sum YMb
ROW_JINT = 2        # sum maxS(YM) * maxS(YpM)
ROW_JUNI = 3        # sum maxS(YM) + maxS(YpM) - inter
ROW_RGB_REND = 4    # sum |renders_rgb - YF*YM|
ROW_RGB_ALT = 5     # sum |alt_rgb     - YF*YM|
ROW_MODEL_NUM = 6   # sum |expected*mask - rgb_gt*mask|
ROW_MODEL_DEN = 7   # sum mask
ROW_MIN_ALPHA = 8   # min over hs alpha (per (b,f); global min taken in JAX)
ROW_IOU_INTER = 9   # S rows of per-sub-frame IoU intersection sums
# followed by S rows of per-sub-frame IoU union sums


def _num_rows(S):
    n = ROW_IOU_INTER + 2 * S
    return ((n + 7) // 8) * 8


# --------------------------------------------------------------------------
# Pallas kernels
# --------------------------------------------------------------------------

def _fused_frame_kernel(*refs, S, use_supervised, use_model):
    """Accumulates all fmo_loss / fmo_model_loss partial sums for one (b,f)
    across HW tiles (grid axis 2, 'arbitrary')."""
    if use_supervised:
        rend_ref, hs_ref, inp_ref, out_ref = refs
    else:
        rend_ref, inp_ref, out_ref = refs
        hs_ref = None

    t = pl.program_id(2)

    @pl.when(t == 0)
    def _init():
        out_ref[...] = jnp.zeros_like(out_ref)
        out_ref[ROW_MIN_ALPHA:ROW_MIN_ALPHA + 1, :] = jnp.full(
            (1, 128), jnp.inf, dtype=out_ref.dtype)

    def acc_scalar(row, val):
        cur = out_ref[row:row + 1, :]
        out_ref[row:row + 1, :] = cur + val

    r = rend_ref[...].astype(jnp.float32)        # (S, 4, HW_t)
    ib = inp_ref[...].astype(jnp.float32)        # (6, HW_t)
    r_rgb = r[:, 0:3, :]                         # (S, 3, HW_t)
    r_a = r[:, 3:4, :]                           # (S, 1, HW_t)

    hs = None
    if use_supervised:
        hs = hs_ref[...].astype(jnp.float32)     # (S, 4, HW_t)
        YM = hs[:, 3:4, :]                       # (S, 1, HW_t)
        YF = hs[:, 0:3, :]                       # (S, 3, HW_t)
        YpM = r_a
        YMb = ((YM + YpM) > 0).astype(jnp.float32)

        # batch_loss(YpM, YM, YMb, do_mult=False): numerator / denominator
        acc_scalar(ROW_MASK_ABS, jnp.sum(jnp.abs(YpM - YM)))
        acc_scalar(ROW_YMB, jnp.sum(YMb))

        # iou_loss(maxS(YM), maxS(YpM))
        mYM = jnp.max(YM, axis=0)                # (1, HW_t)
        mYpM = jnp.max(YpM, axis=0)
        jint = mYM * mYpM
        acc_scalar(ROW_JINT, jnp.sum(jint))
        acc_scalar(ROW_JUNI, jnp.sum(mYM + mYpM - jint))

        # rgb term: both branches of the `min(hs alpha)==1.0` select
        tgt = YF * YM
        acc_scalar(ROW_RGB_REND, jnp.sum(jnp.abs(r_rgb - tgt)))
        alt_rgb = ib[3:6, :][None, :, :] * (1.0 - r_a) + r_rgb
        acc_scalar(ROW_RGB_ALT, jnp.sum(jnp.abs(alt_rgb - tgt)))

        # per-sub-frame IoU sums (ratios combined after full accumulation)
        prod = YM * YpM                          # (S, 1, HW_t)
        isum = jnp.sum(prod, axis=2)             # (S, 1)
        usum = jnp.sum(YM + YpM - prod, axis=2)  # (S, 1)
        cur_i = out_ref[ROW_IOU_INTER:ROW_IOU_INTER + S, :]
        out_ref[ROW_IOU_INTER:ROW_IOU_INTER + S, :] = cur_i + isum
        cur_u = out_ref[ROW_IOU_INTER + S:ROW_IOU_INTER + 2 * S, :]
        out_ref[ROW_IOU_INTER + S:ROW_IOU_INTER + 2 * S, :] = cur_u + usum

        # running min of hs alpha (for the data-dependent renderer select)
        cur_m = out_ref[ROW_MIN_ALPHA:ROW_MIN_ALPHA + 1, :]
        out_ref[ROW_MIN_ALPHA:ROW_MIN_ALPHA + 1, :] = jnp.minimum(cur_m, jnp.min(YM))

    if use_model:
        mod_rgb = jnp.mean(r_rgb * r_a, axis=0)  # (3, HW_t)
        mod_a = jnp.mean(r_a, axis=0)            # (1, HW_t)
        expected = ib[3:6, :] * (1.0 - mod_a) + mod_rgb
        if use_supervised:
            mask = (jnp.mean(hs[:, 3:4, :], axis=0) > 0.05).astype(jnp.float32)
        else:
            mask = (mod_a > 0.05).astype(jnp.float32)
        acc_scalar(ROW_MODEL_NUM,
                   jnp.sum(jnp.abs(expected * mask - ib[0:3, :] * mask)))
        acc_scalar(ROW_MODEL_DEN, jnp.sum(mask))


def _laplacian_kernel(lap_ref, x_ref, out_ref):
    """(lap @ x)^2 column sums; batches packed 3-wide into the 128 lanes."""
    lx = jnp.dot(lap_ref[...], x_ref[...], preferred_element_type=jnp.float32)
    colsq = jnp.sum(lx * lx, axis=0, keepdims=True)          # (1, 128)
    out_ref[...] = jnp.broadcast_to(colsq, out_ref.shape).astype(out_ref.dtype)


def _tv_kernel(tex_ref, out_ref):
    """Anisotropic TV of the wrap-extended texture, computed from the original
    (B,3,T,T) texture with explicit wrap + duplicated row0/col0 edge terms."""
    # TODO(synk): total_variation() is not defined in the source module;
    # standard anisotropic TV (sum of abs neighbor diffs) is assumed here.
    x = tex_ref[...].astype(jnp.float32)                      # (B, 3, T, T)

    def circ_h(a):
        return (jnp.sum(jnp.abs(a[..., :-1] - a[..., 1:])) +
                jnp.sum(jnp.abs(a[..., -1:] - a[..., :1])))

    def circ_v(a):
        return (jnp.sum(jnp.abs(a[..., :-1, :] - a[..., 1:, :])) +
                jnp.sum(jnp.abs(a[..., -1:, :] - a[..., :1, :])))

    tv = circ_h(x) + circ_h(x[:, :, :1, :]) + circ_v(x) + circ_v(x[:, :, :, :1])
    out_ref[...] = jnp.broadcast_to(tv, out_ref.shape).astype(out_ref.dtype)


# --------------------------------------------------------------------------
# pallas_call wrappers
# --------------------------------------------------------------------------

def _pick_hw_tile(HW, S, itemsize):
    """Largest multiple-of-128 divisor of HW whose double-buffered blocks fit a
    conservative VMEM budget (safe on v7x's 64 MiB physical VMEM)."""
    budget_bytes = 16 * 1024 * 1024
    per_lane = (2 * S * 8 + 8) * itemsize * 2   # renders+hs (8-sublane padded) + inp, x2 buffers
    max_lanes = int(max(128, budget_bytes // per_lane))
    max_lanes = min(max_lanes, 8192)
    if HW <= max_lanes or HW % 128 != 0:
        return HW
    tile = (max_lanes // 128) * 128
    while tile >= 128:
        if HW % tile == 0:
            return tile
        tile -= 128
    return HW


def fused_frame_reductions(renders, hs_frames, input_batch, use_supervised, use_model):
    """Single streaming pass over the big tensors; returns (B, F, nrows) raw sums."""
    B, F, S, C, HW = renders.shape
    nrows = _num_rows(S)
    itemsize = max(renders.dtype.itemsize, input_batch.dtype.itemsize)
    hw_t = _pick_hw_tile(HW, S, itemsize)
    nt = HW // hw_t

    kern = functools.partial(_fused_frame_kernel, S=S,
                             use_supervised=use_supervised, use_model=use_model)

    in_specs = [pl.BlockSpec((None, None, S, C, hw_t),
                             lambda b, f, t: (b, f, 0, 0, t))]
    args = [renders]
    bytes_accessed = renders.size * renders.dtype.itemsize
    if use_supervised:
        in_specs.append(pl.BlockSpec((None, None, S, C, hw_t),
                                     lambda b, f, t: (b, f, 0, 0, t)))
        args.append(hs_frames)
        bytes_accessed += hs_frames.size * hs_frames.dtype.itemsize
    in_specs.append(pl.BlockSpec((None, None, 6, hw_t),
                                 lambda b, f, t: (b, f, 0, t)))
    args.append(input_batch)
    bytes_accessed += input_batch.size * input_batch.dtype.itemsize
    bytes_accessed += B * F * nrows * 128 * 4

    out = pl.pallas_call(
        kern,
        out_shape=jax.ShapeDtypeStruct((B, F, nrows, 128), jnp.float32),
        grid=(B, F, nt),
        in_specs=in_specs,
        out_specs=pl.BlockSpec((None, None, nrows, 128),
                               lambda b, f, t: (b, f, 0, 0)),
        compiler_params=pltpu.CompilerParams(
            dimension_semantics=("parallel", "parallel", "arbitrary"),
            vmem_limit_bytes=48 * 1024 * 1024),
        cost_estimate=pl.CostEstimate(
            flops=int(40 * B * F * S * C * HW),
            transcendentals=0,
            bytes_accessed=int(bytes_accessed)),
    )(*args)
    return out[:, :, :, 0]                                    # (B, F, nrows)


def laplacian_loss_pallas(laplacian, vertices):
    """LaplacianLoss.forward(vertices) -> (B,), batches packed into MXU lanes."""
    B, nv, dim = vertices.shape
    lap = laplacian.astype(jnp.float32)
    per_call = max(1, 128 // dim)
    outs = []
    for start in range(0, B, per_call):
        vb = vertices[start:start + per_call]                 # (b, nv, dim)
        b = vb.shape[0]
        x = jnp.transpose(vb, (1, 0, 2)).reshape(nv, b * dim).astype(jnp.float32)
        x = jnp.pad(x, ((0, 0), (0, 128 - b * dim)))
        colsq = pl.pallas_call(
            _laplacian_kernel,
            out_shape=jax.ShapeDtypeStruct((8, 128), jnp.float32),
            grid=(1,),
            in_specs=[pl.BlockSpec((nv, nv), lambda i: (0, 0)),
                      pl.BlockSpec((nv, 128), lambda i: (0, 0))],
            out_specs=pl.BlockSpec((8, 128), lambda i: (0, 0)),
        )(lap, x)
        per_b = colsq[0, :b * dim].reshape(b, dim).sum(axis=-1) / float(nv * dim)
        outs.append(per_b)
    return jnp.concatenate(outs, axis=0)                      # (B,)


def tv_pallas(texture_maps):
    """Total variation (scalar) equivalent to the wrap-extended reference."""
    B, Ct, T, T2 = texture_maps.shape
    out = pl.pallas_call(
        _tv_kernel,
        out_shape=jax.ShapeDtypeStruct((8, 128), jnp.float32),
        grid=(1,),
        in_specs=[pl.BlockSpec((B, Ct, T, T2), lambda i: (0, 0, 0, 0))],
        out_specs=pl.BlockSpec((8, 128), lambda i: (0, 0)),
    )(texture_maps)
    return out[0, 0]


# --------------------------------------------------------------------------
# FMOLoss (Pallas version)
# --------------------------------------------------------------------------

class FMOLossPallas:
    def __init__(self, config, ivertices, faces):
        self.config = config
        self.laplacian = None
        if config['loss_laplacian_weight'] > 0:
            nv = ivertices.shape[0]
            lap = np.zeros([nv, nv], dtype=np.float32)
            lap[faces[:, 0], faces[:, 1]] = -1
            lap[faces[:, 1], faces[:, 0]] = -1
            lap[faces[:, 1], faces[:, 2]] = -1
            lap[faces[:, 2], faces[:, 1]] = -1
            lap[faces[:, 2], faces[:, 0]] = -1
            lap[faces[:, 0], faces[:, 2]] = -1
            r, c = np.diag_indices(nv)
            lap[r, c] = -lap.sum(1)
            for i in range(nv):
                lap[i, :] /= lap[i, i]
            self.laplacian = jnp.asarray(lap)

    def __call__(self, renders, hs_frames, input_batch, translation, quaternion,
                 vertices, texture_maps, faces):
        cfg = self.config
        B, F, S, C, H, W = renders.shape
        HW = H * W
        # Free reshapes; keep the HBM dtype (upcast happens on VMEM tiles).
        rend_flat = renders.reshape(B, F, S, C, HW)
        hs_flat = hs_frames.reshape(B, F, S, C, HW)
        inp_flat = input_batch.reshape(B, F, 6, HW)

        use_model = bool(cfg['loss_use_model'])
        use_sup = bool(cfg['loss_use_supervised'])

        vals = None
        if use_model or use_sup:
            vals = fused_frame_reductions(rend_flat, hs_flat, inp_flat,
                                          use_sup, use_model)      # (B, F, nrows)

        # ---------------- model loss (fmo_model_loss) ----------------
        model_loss = 0
        model_loss_perframe = []
        if use_model:
            per_frame = vals[:, :, ROW_MODEL_NUM] / (vals[:, :, ROW_MODEL_DEN] + 0.01)
            for frmi in range(F):
                temp_loss = per_frame[:, frmi]                      # (B,)
                # NOTE: device array kept on-device (reference used .item(),
                # which forces a host sync per frame); no blocking here.
                model_loss_perframe.append(temp_loss)
                model_loss = model_loss + temp_loss / F

        # ---------------- supervised loss (fmo_loss per frame) ----------------
        supervised_loss = 0 * model_loss
        if use_sup:
            wm = float(cfg['loss_mask_weight'])
            wjm = float(cfg['loss_jointm_iou_weight'])
            wrgb = float(cfg['loss_rgb_weight'])
            wiou = float(cfg['loss_iou_weight'])

            min_alpha = jnp.min(vals[:, :, ROW_MIN_ALPHA])
            s_ymb = vals[:, :, ROW_YMB]
            term = jnp.zeros((B, F), jnp.float32)
            if wm > 0:
                term = term + wm * vals[:, :, ROW_MASK_ABS] / s_ymb
            if wjm > 0:
                term = term + wjm * (1.0 - vals[:, :, ROW_JINT] / vals[:, :, ROW_JUNI])
            if wrgb > 0:
                # data-dependent host `if` in the reference -> traced select
                rgb_sum = jnp.where(min_alpha == 1.0,
                                    vals[:, :, ROW_RGB_ALT],
                                    vals[:, :, ROW_RGB_REND])
                term = term + wrgb * rgb_sum / (3.0 * s_ymb)
            if wiou > 0:
                inter_s = vals[:, :, ROW_IOU_INTER:ROW_IOU_INTER + S]
                union_s = vals[:, :, ROW_IOU_INTER + S:ROW_IOU_INTER + 2 * S]
                term = term + wiou * (1.0 - jnp.mean(inter_s / union_s, axis=-1))

            for frmi in range(F):
                # mirrors the reference's torch.zeros((B,1)) + (B,) broadcasting
                loss1 = jnp.zeros((B, 1), jnp.float32) + term[:, frmi]
                supervised_loss = supervised_loss + loss1 / F

        if not use_model:
            model_loss = supervised_loss

        # ---------------- laplacian loss ----------------
        loss_lap = 0 * supervised_loss
        if cfg['predict_vertices'] and cfg['loss_laplacian_weight'] > 0:
            loss_lap = cfg['loss_laplacian_weight'] * laplacian_loss_pallas(
                self.laplacian, vertices)

        # ---------------- total variation ----------------
        loss_tv = 0 * supervised_loss
        if cfg['loss_total_variation'] > 0:
            loss_tv = (cfg['loss_total_variation'] * tv_pallas(texture_maps)
                       / (3 * (cfg['texture_size'] + 1) ** 2))

        loss = supervised_loss + loss_lap + model_loss + loss_tv
        return supervised_loss, model_loss, loss_lap, loss_tv, loss, model_loss_perframe


# --------------------------------------------------------------------------
# main
# --------------------------------------------------------------------------

if __name__ == "__main__":
    # B=1 so the reference's per-frame `.item()` and the [B,1]+[B] broadcasting
    # in fmo_loss are well-defined.
    B, F, S, H, W = 1, 2, 2, 16, 16
    NV, T = 16, 16

    config = {
        'loss_use_model': True,
        'loss_use_supervised': True,
        'loss_mask_weight': 1.0,
        'loss_jointm_iou_weight': 1.0,
        'loss_rgb_weight': 1.0,
        'loss_iou_weight': 1.0,
        'predict_vertices': True,
        'loss_laplacian_weight': 1.0,
        'loss_total_variation': 1.0,
        'texture_size': T,
    }

    key = jax.random.PRNGKey(0)
    keys = jax.random.split(key, 8)
    renders = jax.random.uniform(keys[0], (B, F, S, 4, H, W), jnp.float32)
    hs_frames = jax.random.uniform(keys[1], (B, F, S, 4, H, W), jnp.float32)
    input_batch = jax.random.uniform(keys[2], (B, F, 6, H, W), jnp.float32)
    vertices = jax.random.normal(keys[3], (B, NV, 3), jnp.float32)
    texture_maps = jax.random.uniform(keys[4], (B, 3, T, T), jnp.float32)
    translation = jax.random.normal(keys[5], (B, F, 3), jnp.float32)
    quaternion = jax.random.normal(keys[6], (B, F, 4), jnp.float32)

    # deterministic synthetic "ring" mesh for the Laplacian construction
    ivertices = np.asarray(jax.random.normal(keys[7], (NV, 3), jnp.float32))
    idx = np.arange(NV)
    faces = np.stack([idx, (idx + 1) % NV, (idx + 2) % NV], axis=1).astype(np.int32)

    fmo_loss_mod = FMOLossPallas(config, ivertices, faces)
    outs = fmo_loss_mod(renders, hs_frames, input_batch, translation, quaternion,
                        vertices, texture_maps, faces)
    supervised_loss, model_loss, loss_lap, loss_tv, loss, perframe = outs
    jax.block_until_ready((supervised_loss, model_loss, loss_lap, loss_tv, loss, perframe))
    print("KERNEL_OK")
</pallas_src>

<mosaic_0001>
module attributes {stable_mosaic.version = 11 : i64} {
  func.func @_fused_frame_kernel(%arg0: i32, %arg1: i32, %arg2: i32, %arg3: memref<1x1x2x4x256xf32, #tpu.memory_space<vmem>>, %arg4: memref<1x1x2x4x256xf32, #tpu.memory_space<vmem>>, %arg5: memref<1x1x6x256xf32, #tpu.memory_space<vmem>>, %arg6: memref<1x1x16x128xf32, #tpu.memory_space<vmem>>) attributes {dimension_semantics = [#tpu.dimension_semantics<parallel>, #tpu.dimension_semantics<parallel>, #tpu.dimension_semantics<arbitrary>], iteration_bounds = array<i64: 1, 2, 1>, scalar_prefetch = 0 : i64, scratch_operands = 0 : i64, tpu.core_type = #tpu.core_type<tc>, window_params = [{transform_indices = @transform_0, window_bounds = array<i64: 1, 1, 2, 4, 256>}, {transform_indices = @transform_1, window_bounds = array<i64: 1, 1, 2, 4, 256>}, {transform_indices = @transform_2, window_bounds = array<i64: 1, 1, 6, 256>}, {transform_indices = @transform_3, window_bounds = array<i64: 1, 1, 16, 128>}]} {
    %c0_i32 = arith.constant 0 : i32
    %0 = arith.cmpi eq, %arg2, %c0_i32 : i32
    %1 = arith.extui %0 : i1 to i32
    %c0_i32_0 = arith.constant 0 : i32
    %2 = arith.cmpi ne, %1, %c0_i32_0 : i32
    scf.if %2 {
      %cst_114 = arith.constant 0.000000e+00 : f32
      %186 = vector.broadcast %cst_114 : f32 to vector<16x128xf32>
      %c0_115 = arith.constant 0 : index
      %c0_116 = arith.constant 0 : index
      %c0_117 = arith.constant 0 : index
      %c0_118 = arith.constant 0 : index
      %187 = vector.load %arg6[%c0_115, %c0_116, %c0_117, %c0_118] : memref<1x1x16x128xf32, #tpu.memory_space<vmem>>, vector<1x1x16x128xf32>
      %188 = vector.shape_cast %187 : vector<1x1x16x128xf32> to vector<16x128xf32>
      %189 = vector.shape_cast %186 : vector<16x128xf32> to vector<1x1x16x128xf32>
      tpu.vector_store %arg6[%c0_115, %c0_116, %c0_117, %c0_118], %189 {strides = array<i32>} : memref<1x1x16x128xf32, #tpu.memory_space<vmem>>, vector<1x1x16x128xf32>,
      %cst_119 = arith.constant 0x7F800000 : f32
      %190 = vector.broadcast %cst_119 : f32 to vector<1x128xf32>
      %c0_120 = arith.constant 0 : index
      %c0_121 = arith.constant 0 : index
      %c8_122 = arith.constant 8 : index
      %c0_123 = arith.constant 0 : index
      %191 = vector.load %arg6[%c0_120, %c0_121, %c8_122, %c0_123] : memref<1x1x16x128xf32, #tpu.memory_space<vmem>>, vector<1x1x1x128xf32>
      %192 = vector.shape_cast %191 : vector<1x1x1x128xf32> to vector<1x128xf32>
      %193 = vector.shape_cast %190 : vector<1x128xf32> to vector<1x1x1x128xf32>
      tpu.vector_store %arg6[%c0_120, %c0_121, %c8_122, %c0_123], %193 {strides = array<i32>} : memref<1x1x16x128xf32, #tpu.memory_space<vmem>>, vector<1x1x1x128xf32>,
    } else {
    }
    %c0 = arith.constant 0 : index
    %c0_1 = arith.constant 0 : index
    %c0_2 = arith.constant 0 : index
    %c0_3 = arith.constant 0 : index
    %c0_4 = arith.constant 0 : index
    %3 = vector.load %arg3[%c0, %c0_1, %c0_2, %c0_3, %c0_4] : memref<1x1x2x4x256xf32, #tpu.memory_space<vmem>>, vector<1x1x2x4x256xf32>
    %4 = vector.shape_cast %3 : vector<1x1x2x4x256xf32> to vector<2x4x256xf32>
    %c0_5 = arith.constant 0 : index
    %c0_6 = arith.constant 0 : index
    %c0_7 = arith.constant 0 : index
    %c0_8 = arith.constant 0 : index
    %5 = vector.load %arg5[%c0_5, %c0_6, %c0_7, %c0_8] : memref<1x1x6x256xf32, #tpu.memory_space<vmem>>, vector<1x1x6x256xf32>
    %6 = vector.shape_cast %5 : vector<1x1x6x256xf32> to vector<6x256xf32>
    %7 = vector.extract_strided_slice %4 {offsets = [0, 0, 0], sizes = [2, 3, 256], strides = [1, 1, 1]} : vector<2x4x256xf32> to vector<2x3x256xf32>
    %8 = vector.extract_strided_slice %4 {offsets = [0, 3, 0], sizes = [2, 1, 256], strides = [1, 1, 1]} : vector<2x4x256xf32> to vector<2x1x256xf32>
    %c0_9 = arith.constant 0 : index
    %c0_10 = arith.constant 0 : index
    %c0_11 = arith.constant 0 : index
    %c0_12 = arith.constant 0 : index
    %c0_13 = arith.constant 0 : index
    %9 = vector.load %arg4[%c0_9, %c0_10, %c0_11, %c0_12, %c0_13] : memref<1x1x2x4x256xf32, #tpu.memory_space<vmem>>, vector<1x1x2x4x256xf32>
    %10 = vector.shape_cast %9 : vector<1x1x2x4x256xf32> to vector<2x4x256xf32>
    %11 = vector.extract_strided_slice %10 {offsets = [0, 3, 0], sizes = [2, 1, 256], strides = [1, 1, 1]} : vector<2x4x256xf32> to vector<2x1x256xf32>
    %12 = vector.extract_strided_slice %10 {offsets = [0, 0, 0], sizes = [2, 3, 256], strides = [1, 1, 1]} : vector<2x4x256xf32> to vector<2x3x256xf32>
    %13 = arith.addf %11, %8 : vector<2x1x256xf32>
    %cst = arith.constant 0.000000e+00 : f32
    %14 = vector.broadcast %cst : f32 to vector<2x1x256xf32>
    %15 = arith.cmpf ogt, %13, %14 : vector<2x1x256xf32>
    %16 = arith.extui %15 : vector<2x1x256xi1> to vector<2x1x256xi32>
    %17 = arith.sitofp %16 : vector<2x1x256xi32> to vector<2x1x256xf32>
    %18 = arith.subf %8, %11 : vector<2x1x256xf32>
    %19 = math.absf %18 : vector<2x1x256xf32>
    %20 = vector.shape_cast %19 : vector<2x1x256xf32> to vector<1x2x1x256xf32>
    %cst_14 = arith.constant dense<0.000000e+00> : vector<1xf32>
    %21 = vector.multi_reduction <add>, %20, %cst_14 [1, 2, 3] : vector<1x2x1x256xf32> to vector<1xf32>
    %22 = vector.shape_cast %21 : vector<1xf32> to vector<1x1x1x1xf32>
    %23 = vector.extract %22[0, 0, 0, 0] : f32 from vector<1x1x1x1xf32>
    %c0_15 = arith.constant 0 : index
    %c0_16 = arith.constant 0 : index
    %c0_17 = arith.constant 0 : index
    %c0_18 = arith.constant 0 : index
    %24 = vector.load %arg6[%c0_15, %c0_16, %c0_17, %c0_18] : memref<1x1x16x128xf32, #tpu.memory_space<vmem>>, vector<1x1x1x128xf32>
    %25 = vector.shape_cast %24 : vector<1x1x1x128xf32> to vector<1x128xf32>
    %26 = vector.broadcast %23 : f32 to vector<1x128xf32>
    %27 = arith.addf %25, %26 : vector<1x128xf32>
    %c0_19 = arith.constant 0 : index
    %c0_20 = arith.constant 0 : index
    %c0_21 = arith.constant 0 : index
    %c0_22 = arith.constant 0 : index
    %28 = vector.load %arg6[%c0_19, %c0_20, %c0_21, %c0_22] : memref<1x1x16x128xf32, #tpu.memory_space<vmem>>, vector<1x1x1x128xf32>
    %29 = vector.shape_cast %28 : vector<1x1x1x128xf32> to vector<1x128xf32>
    %30 = vector.shape_cast %27 : vector<1x128xf32> to vector<1x1x1x128xf32>
    tpu.vector_store %arg6[%c0_19, %c0_20, %c0_21, %c0_22], %30 {strides = array<i32>} : memref<1x1x16x128xf32, #tpu.memory_space<vmem>>, vector<1x1x1x128xf32>,
    %31 = vector.shape_cast %17 : vector<2x1x256xf32> to vector<1x2x1x256xf32>
    %cst_23 = arith.constant dense<0.000000e+00> : vector<1xf32>
    %32 = vector.multi_reduction <add>, %31, %cst_23 [1, 2, 3] : vector<1x2x1x256xf32> to vector<1xf32>
    %33 = vector.shape_cast %32 : vector<1xf32> to vector<1x1x1x1xf32>
    %34 = vector.extract %33[0, 0, 0, 0] : f32 from vector<1x1x1x1xf32>
    %c0_24 = arith.constant 0 : index
    %c0_25 = arith.constant 0 : index
    %c1 = arith.constant 1 : index
    %c0_26 = arith.constant 0 : index
    %35 = vector.load %arg6[%c0_24, %c0_25, %c1, %c0_26] : memref<1x1x16x128xf32, #tpu.memory_space<vmem>>, vector<1x1x1x128xf32>
    %36 = vector.shape_cast %35 : vector<1x1x1x128xf32> to vector<1x128xf32>
    %37 = vector.broadcast %34 : f32 to vector<1x128xf32>
    %38 = arith.addf %36, %37 : vector<1x128xf32>
    %c0_27 = arith.constant 0 : index
    %c0_28 = arith.constant 0 : index
    %c1_29 = arith.constant 1 : index
    %c0_30 = arith.constant 0 : index
    %39 = vector.load %arg6[%c0_27, %c0_28, %c1_29, %c0_30] : memref<1x1x16x128xf32, #tpu.memory_space<vmem>>, vector<1x1x1x128xf32>
    %40 = vector.shape_cast %39 : vector<1x1x1x128xf32> to vector<1x128xf32>
    %41 = vector.shape_cast %38 : vector<1x128xf32> to vector<1x1x1x128xf32>
    tpu.vector_store %arg6[%c0_27, %c0_28, %c1_29, %c0_30], %41 {strides = array<i32>} : memref<1x1x16x128xf32, #tpu.memory_space<vmem>>, vector<1x1x1x128xf32>,
    %cst_31 = arith.constant dense<0xFF800000> : vector<1x256xf32>
    %42 = vector.multi_reduction <maximumf>, %11, %cst_31 [0] : vector<2x1x256xf32> to vector<1x256xf32>
    %cst_32 = arith.constant dense<0xFF800000> : vector<1x256xf32>
    %43 = vector.multi_reduction <maximumf>, %8, %cst_32 [0] : vector<2x1x256xf32> to vector<1x256xf32>
    %44 = arith.mulf %42, %43 : vector<1x256xf32>
    %45 = vector.shape_cast %44 : vector<1x256xf32> to vector<1x1x256xf32>
    %cst_33 = arith.constant dense<0.000000e+00> : vector<1xf32>
    %46 = vector.multi_reduction <add>, %45, %cst_33 [1, 2] : vector<1x1x256xf32> to vector<1xf32>
    %47 = vector.shape_cast %46 : vector<1xf32> to vector<1x1x1xf32>
    %48 = vector.extract %47[0, 0, 0] : f32 from vector<1x1x1xf32>
    %c0_34 = arith.constant 0 : index
    %c0_35 = arith.constant 0 : index
    %c2 = arith.constant 2 : index
    %c0_36 = arith.constant 0 : index
    %49 = vector.load %arg6[%c0_34, %c0_35, %c2, %c0_36] : memref<1x1x16x128xf32, #tpu.memory_space<vmem>>, vector<1x1x1x128xf32>
    %50 = vector.shape_cast %49 : vector<1x1x1x128xf32> to vector<1x128xf32>
    %51 = vector.broadcast %48 : f32 to vector<1x128xf32>
    %52 = arith.addf %50, %51 : vector<1x128xf32>
    %c0_37 = arith.constant 0 : index
    %c0_38 = arith.constant 0 : index
    %c2_39 = arith.constant 2 : index
    %c0_40 = arith.constant 0 : index
    %53 = vector.load %arg6[%c0_37, %c0_38, %c2_39, %c0_40] : memref<1x1x16x128xf32, #tpu.memory_space<vmem>>, vector<1x1x1x128xf32>
    %54 = vector.shape_cast %53 : vector<1x1x1x128xf32> to vector<1x128xf32>
    %55 = vector.shape_cast %52 : vector<1x128xf32> to vector<1x1x1x128xf32>
    tpu.vector_store %arg6[%c0_37, %c0_38, %c2_39, %c0_40], %55 {strides = array<i32>} : memref<1x1x16x128xf32, #tpu.memory_space<vmem>>, vector<1x1x1x128xf32>,
    %56 = arith.addf %42, %43 : vector<1x256xf32>
    %57 = arith.subf %56, %44 : vector<1x256xf32>
    %58 = vector.shape_cast %57 : vector<1x256xf32> to vector<1x1x256xf32>
    %cst_41 = arith.constant dense<0.000000e+00> : vector<1xf32>
    %59 = vector.multi_reduction <add>, %58, %cst_41 [1, 2] : vector<1x1x256xf32> to vector<1xf32>
    %60 = vector.shape_cast %59 : vector<1xf32> to vector<1x1x1xf32>
    %61 = vector.extract %60[0, 0, 0] : f32 from vector<1x1x1xf32>
    %c0_42 = arith.constant 0 : index
    %c0_43 = arith.constant 0 : index
    %c3 = arith.constant 3 : index
    %c0_44 = arith.constant 0 : index
    %62 = vector.load %arg6[%c0_42, %c0_43, %c3, %c0_44] : memref<1x1x16x128xf32, #tpu.memory_space<vmem>>, vector<1x1x1x128xf32>
    %63 = vector.shape_cast %62 : vector<1x1x1x128xf32> to vector<1x128xf32>
    %64 = vector.broadcast %61 : f32 to vector<1x128xf32>
    %65 = arith.addf %63, %64 : vector<1x128xf32>
    %c0_45 = arith.constant 0 : index
    %c0_46 = arith.constant 0 : index
    %c3_47 = arith.constant 3 : index
    %c0_48 = arith.constant 0 : index
    %66 = vector.load %arg6[%c0_45, %c0_46, %c3_47, %c0_48] : memref<1x1x16x128xf32, #tpu.memory_space<vmem>>, vector<1x1x1x128xf32>
    %67 = vector.shape_cast %66 : vector<1x1x1x128xf32> to vector<1x128xf32>
    %68 = vector.shape_cast %65 : vector<1x128xf32> to vector<1x1x1x128xf32>
    tpu.vector_store %arg6[%c0_45, %c0_46, %c3_47, %c0_48], %68 {strides = array<i32>} : memref<1x1x16x128xf32, #tpu.memory_space<vmem>>, vector<1x1x1x128xf32>,
    %69 = vector.broadcast %11 : vector<2x1x256xf32> to vector<2x3x256xf32>
    %70 = arith.mulf %12, %69 : vector<2x3x256xf32>
    %71 = arith.subf %7, %70 : vector<2x3x256xf32>
    %72 = math.absf %71 : vector<2x3x256xf32>
    %73 = vector.shape_cast %72 : vector<2x3x256xf32> to vector<1x2x3x256xf32>
    %cst_49 = arith.constant dense<0.000000e+00> : vector<1xf32>
    %74 = vector.multi_reduction <add>, %73, %cst_49 [1, 2, 3] : vector<1x2x3x256xf32> to vector<1xf32>
    %75 = vector.shape_cast %74 : vector<1xf32> to vector<1x1x1x1xf32>
    %76 = vector.extract %75[0, 0, 0, 0] : f32 from vector<1x1x1x1xf32>
    %c0_50 = arith.constant 0 : index
    %c0_51 = arith.constant 0 : index
    %c4 = arith.constant 4 : index
    %c0_52 = arith.constant 0 : index
    %77 = vector.load %arg6[%c0_50, %c0_51, %c4, %c0_52] : memref<1x1x16x128xf32, #tpu.memory_space<vmem>>, vector<1x1x1x128xf32>
    %78 = vector.shape_cast %77 : vector<1x1x1x128xf32> to vector<1x128xf32>
    %79 = vector.broadcast %76 : f32 to vector<1x128xf32>
    %80 = arith.addf %78, %79 : vector<1x128xf32>
    %c0_53 = arith.constant 0 : index
    %c0_54 = arith.constant 0 : index
    %c4_55 = arith.constant 4 : index
    %c0_56 = arith.constant 0 : index
    %81 = vector.load %arg6[%c0_53, %c0_54, %c4_55, %c0_56] : memref<1x1x16x128xf32, #tpu.memory_space<vmem>>, vector<1x1x1x128xf32>
    %82 = vector.shape_cast %81 : vector<1x1x1x128xf32> to vector<1x128xf32>
    %83 = vector.shape_cast %80 : vector<1x128xf32> to vector<1x1x1x128xf32>
    tpu.vector_store %arg6[%c0_53, %c0_54, %c4_55, %c0_56], %83 {strides = array<i32>} : memref<1x1x16x128xf32, #tpu.memory_space<vmem>>, vector<1x1x1x128xf32>,
    %84 = vector.extract_strided_slice %6 {offsets = [3, 0], sizes = [3, 256], strides = [1, 1]} : vector<6x256xf32> to vector<3x256xf32>
    %85 = vector.shape_cast %84 : vector<3x256xf32> to vector<1x3x256xf32>
    %cst_57 = arith.constant 1.000000e+00 : f32
    %86 = vector.broadcast %cst_57 : f32 to vector<2x1x256xf32>
    %87 = arith.subf %86, %8 : vector<2x1x256xf32>
    %88 = vector.broadcast %85 : vector<1x3x256xf32> to vector<2x3x256xf32>
    %89 = vector.broadcast %87 : vector<2x1x256xf32> to vector<2x3x256xf32>
    %90 = arith.mulf %88, %89 : vector<2x3x256xf32>
    %91 = arith.addf %90, %7 : vector<2x3x256xf32>
    %92 = arith.subf %91, %70 : vector<2x3x256xf32>
    %93 = math.absf %92 : vector<2x3x256xf32>
    %94 = vector.shape_cast %93 : vector<2x3x256xf32> to vector<1x2x3x256xf32>
    %cst_58 = arith.constant dense<0.000000e+00> : vector<1xf32>
    %95 = vector.multi_reduction <add>, %94, %cst_58 [1, 2, 3] : vector<1x2x3x256xf32> to vector<1xf32>
    %96 = vector.shape_cast %95 : vector<1xf32> to vector<1x1x1x1xf32>
    %97 = vector.extract %96[0, 0, 0, 0] : f32 from vector<1x1x1x1xf32>
    %c0_59 = arith.constant 0 : index
    %c0_60 = arith.constant 0 : index
    %c5 = arith.constant 5 : index
    %c0_61 = arith.constant 0 : index
    %98 = vector.load %arg6[%c0_59, %c0_60, %c5, %c0_61] : memref<1x1x16x128xf32, #tpu.memory_space<vmem>>, vector<1x1x1x128xf32>
    %99 = vector.shape_cast %98 : vector<1x1x1x128xf32> to vector<1x128xf32>
    %100 = vector.broadcast %97 : f32 to vector<1x128xf32>
    %101 = arith.addf %99, %100 : vector<1x128xf32>
    %c0_62 = arith.constant 0 : index
    %c0_63 = arith.constant 0 : index
    %c5_64 = arith.constant 5 : index
    %c0_65 = arith.constant 0 : index
    %102 = vector.load %arg6[%c0_62, %c0_63, %c5_64, %c0_65] : memref<1x1x16x128xf32, #tpu.memory_space<vmem>>, vector<1x1x1x128xf32>
    %103 = vector.shape_cast %102 : vector<1x1x1x128xf32> to vector<1x128xf32>
    %104 = vector.shape_cast %101 : vector<1x128xf32> to vector<1x1x1x128xf32>
    tpu.vector_store %arg6[%c0_62, %c0_63, %c5_64, %c0_65], %104 {strides = array<i32>} : memref<1x1x16x128xf32, #tpu.memory_space<vmem>>, vector<1x1x1x128xf32>,
    %105 = arith.mulf %11, %8 : vector<2x1x256xf32>
    %cst_66 = arith.constant dense<0.000000e+00> : vector<2x1xf32>
    %106 = vector.multi_reduction <add>, %105, %cst_66 [2] : vector<2x1x256xf32> to vector<2x1xf32>
    %107 = arith.addf %11, %8 : vector<2x1x256xf32>
    %108 = arith.subf %107, %105 : vector<2x1x256xf32>
    %cst_67 = arith.constant dense<0.000000e+00> : vector<2x1xf32>
    %109 = vector.multi_reduction <add>, %108, %cst_67 [2] : vector<2x1x256xf32> to vector<2x1xf32>
    %c0_68 = arith.constant 0 : index
    %c0_69 = arith.constant 0 : index
    %c9 = arith.constant 9 : index
    %c0_70 = arith.constant 0 : index
    %110 = vector.load %arg6[%c0_68, %c0_69, %c9, %c0_70] : memref<1x1x16x128xf32, #tpu.memory_space<vmem>>, vector<1x1x2x128xf32>
    %111 = vector.shape_cast %110 : vector<1x1x2x128xf32> to vector<2x128xf32>
    %112 = vector.broadcast %106 : vector<2x1xf32> to vector<2x128xf32>
    %113 = arith.addf %111, %112 : vector<2x128xf32>
    %c0_71 = arith.constant 0 : index
    %c0_72 = arith.constant 0 : index
    %c9_73 = arith.constant 9 : index
    %c0_74 = arith.constant 0 : index
    %114 = vector.load %arg6[%c0_71, %c0_72, %c9_73, %c0_74] : memref<1x1x16x128xf32, #tpu.memory_space<vmem>>, vector<1x1x2x128xf32>
    %115 = vector.shape_cast %114 : vector<1x1x2x128xf32> to vector<2x128xf32>
    %116 = vector.shape_cast %113 : vector<2x128xf32> to vector<1x1x2x128xf32>
    tpu.vector_store %arg6[%c0_71, %c0_72, %c9_73, %c0_74], %116 {strides = array<i32>} : memref<1x1x16x128xf32, #tpu.memory_space<vmem>>, vector<1x1x2x128xf32>,
    %c0_75 = arith.constant 0 : index
    %c0_76 = arith.constant 0 : index
    %c11 = arith.constant 11 : index
    %c0_77 = arith.constant 0 : index
    %117 = vector.load %arg6[%c0_75, %c0_76, %c11, %c0_77] : memref<1x1x16x128xf32, #tpu.memory_space<vmem>>, vector<1x1x2x128xf32>
    %118 = vector.shape_cast %117 : vector<1x1x2x128xf32> to vector<2x128xf32>
    %119 = vector.broadcast %109 : vector<2x1xf32> to vector<2x128xf32>
    %120 = arith.addf %118, %119 : vector<2x128xf32>
    %c0_78 = arith.constant 0 : index
    %c0_79 = arith.constant 0 : index
    %c11_80 = arith.constant 11 : index
    %c0_81 = arith.constant 0 : index
    %121 = vector.load %arg6[%c0_78, %c0_79, %c11_80, %c0_81] : memref<1x1x16x128xf32, #tpu.memory_space<vmem>>, vector<1x1x2x128xf32>
    %122 = vector.shape_cast %121 : vector<1x1x2x128xf32> to vector<2x128xf32>
    %123 = vector.shape_cast %120 : vector<2x128xf32> to vector<1x1x2x128xf32>
    tpu.vector_store %arg6[%c0_78, %c0_79, %c11_80, %c0_81], %123 {strides = array<i32>} : memref<1x1x16x128xf32, #tpu.memory_space<vmem>>, vector<1x1x2x128xf32>,
    %c0_82 = arith.constant 0 : index
    %c0_83 = arith.constant 0 : index
    %c8 = arith.constant 8 : index
    %c0_84 = arith.constant 0 : index
    %124 = vector.load %arg6[%c0_82, %c0_83, %c8, %c0_84] : memref<1x1x16x128xf32, #tpu.memory_space<vmem>>, vector<1x1x1x128xf32>
    %125 = vector.shape_cast %124 : vector<1x1x1x128xf32> to vector<1x128xf32>
    %126 = vector.shape_cast %11 : vector<2x1x256xf32> to vector<1x2x1x256xf32>
    %cst_85 = arith.constant dense<0x7F800000> : vector<1xf32>
    %127 = vector.multi_reduction <minimumf>, %126, %cst_85 [1, 2, 3] : vector<1x2x1x256xf32> to vector<1xf32>
    %128 = vector.shape_cast %127 : vector<1xf32> to vector<1x1x1x1xf32>
    %129 = vector.extract %128[0, 0, 0, 0] : f32 from vector<1x1x1x1xf32>
    %130 = vector.broadcast %129 : f32 to vector<1x128xf32>
    %131 = arith.minimumf %125, %130 : vector<1x128xf32>
    %c0_86 = arith.constant 0 : index
    %c0_87 = arith.constant 0 : index
    %c8_88 = arith.constant 8 : index
    %c0_89 = arith.constant 0 : index
    %132 = vector.load %arg6[%c0_86, %c0_87, %c8_88, %c0_89] : memref<1x1x16x128xf32, #tpu.memory_space<vmem>>, vector<1x1x1x128xf32>
    %133 = vector.shape_cast %132 : vector<1x1x1x128xf32> to vector<1x128xf32>
    %134 = vector.shape_cast %131 : vector<1x128xf32> to vector<1x1x1x128xf32>
    tpu.vector_store %arg6[%c0_86, %c0_87, %c8_88, %c0_89], %134 {strides = array<i32>} : memref<1x1x16x128xf32, #tpu.memory_space<vmem>>, vector<1x1x1x128xf32>,
    %135 = vector.broadcast %8 : vector<2x1x256xf32> to vector<2x3x256xf32>
    %136 = arith.mulf %7, %135 : vector<2x3x256xf32>
    %cst_90 = arith.constant dense<0.000000e+00> : vector<3x256xf32>
    %137 = vector.multi_reduction <add>, %136, %cst_90 [0] : vector<2x3x256xf32> to vector<3x256xf32>
    %cst_91 = arith.constant 2.000000e+00 : f32
    %138 = vector.broadcast %cst_91 : f32 to vector<3x256xf32>
    %139 = arith.divf %137, %138 : vector<3x256xf32>
    %cst_92 = arith.constant dense<0.000000e+00> : vector<1x256xf32>
    %140 = vector.multi_reduction <add>, %8, %cst_92 [0] : vector<2x1x256xf32> to vector<1x256xf32>
    %cst_93 = arith.constant 2.000000e+00 : f32
    %141 = vector.broadcast %cst_93 : f32 to vector<1x256xf32>
    %142 = arith.divf %140, %141 : vector<1x256xf32>
    %143 = vector.extract_strided_slice %6 {offsets = [3, 0], sizes = [3, 256], strides = [1, 1]} : vector<6x256xf32> to vector<3x256xf32>
    %cst_94 = arith.constant 1.000000e+00 : f32
    %144 = vector.broadcast %cst_94 : f32 to vector<1x256xf32>
    %145 = arith.subf %144, %142 : vector<1x256xf32>
    %146 = vector.broadcast %145 : vector<1x256xf32> to vector<3x256xf32>
    %147 = arith.mulf %143, %146 : vector<3x256xf32>
    %148 = arith.addf %147, %139 : vector<3x256xf32>
    %149 = vector.extract_strided_slice %10 {offsets = [0, 3, 0], sizes = [2, 1, 256], strides = [1, 1, 1]} : vector<2x4x256xf32> to vector<2x1x256xf32>
    %cst_95 = arith.constant dense<0.000000e+00> : vector<1x256xf32>
    %150 = vector.multi_reduction <add>, %149, %cst_95 [0] : vector<2x1x256xf32> to vector<1x256xf32>
    %cst_96 = arith.constant 2.000000e+00 : f32
    %151 = vector.broadcast %cst_96 : f32 to vector<1x256xf32>
    %152 = arith.divf %150, %151 : vector<1x256xf32>
    %cst_97 = arith.constant 5.000000e-02 : f32
    %153 = vector.broadcast %cst_97 : f32 to vector<1x256xf32>
    %154 = arith.cmpf ogt, %152, %153 : vector<1x256xf32>
    %155 = arith.extui %154 : vector<1x256xi1> to vector<1x256xi32>
    %156 = arith.sitofp %155 : vector<1x256xi32> to vector<1x256xf32>
    %157 = vector.broadcast %156 : vector<1x256xf32> to vector<3x256xf32>
    %158 = arith.mulf %148, %157 : vector<3x256xf32>
    %159 = vector.extract_strided_slice %6 {offsets = [0, 0], sizes = [3, 256], strides = [1, 1]} : vector<6x256xf32> to vector<3x256xf32>
    %160 = vector.broadcast %156 : vector<1x256xf32> to vector<3x256xf32>
    %161 = arith.mulf %159, %160 : vector<3x256xf32>
    %162 = arith.subf %158, %161 : vector<3x256xf32>
    %163 = math.absf %162 : vector<3x256xf32>
    %164 = vector.shape_cast %163 : vector<3x256xf32> to vector<1x3x256xf32>
    %cst_98 = arith.constant dense<0.000000e+00> : vector<1xf32>
    %165 = vector.multi_reduction <add>, %164, %cst_98 [1, 2] : vector<1x3x256xf32> to vector<1xf32>
    %166 = vector.shape_cast %165 : vector<1xf32> to vector<1x1x1xf32>
    %167 = vector.extract %166[0, 0, 0] : f32 from vector<1x1x1xf32>
    %c0_99 = arith.constant 0 : index
    %c0_100 = arith.constant 0 : index
    %c6 = arith.constant 6 : index
    %c0_101 = arith.constant 0 : index
    %168 = vector.load %arg6[%c0_99, %c0_100, %c6, %c0_101] : memref<1x1x16x128xf32, #tpu.memory_space<vmem>>, vector<1x1x1x128xf32>
    %169 = vector.shape_cast %168 : vector<1x1x1x128xf32> to vector<1x128xf32>
    %170 = vector.broadcast %167 : f32 to vector<1x128xf32>
    %171 = arith.addf %169, %170 : vector<1x128xf32>
    %c0_102 = arith.constant 0 : index
    %c0_103 = arith.constant 0 : index
    %c6_104 = arith.constant 6 : index
    %c0_105 = arith.constant 0 : index
    %172 = vector.load %arg6[%c0_102, %c0_103, %c6_104, %c0_105] : memref<1x1x16x128xf32, #tpu.memory_space<vmem>>, vector<1x1x1x128xf32>
    %173 = vector.shape_cast %172 : vector<1x1x1x128xf32> to vector<1x128xf32>
    %174 = vector.shape_cast %171 : vector<1x128xf32> to vector<1x1x1x128xf32>
    tpu.vector_store %arg6[%c0_102, %c0_103, %c6_104, %c0_105], %174 {strides = array<i32>} : memref<1x1x16x128xf32, #tpu.memory_space<vmem>>, vector<1x1x1x128xf32>,
    %175 = vector.shape_cast %156 : vector<1x256xf32> to vector<1x1x256xf32>
    %cst_106 = arith.constant dense<0.000000e+00> : vector<1xf32>
    %176 = vector.multi_reduction <add>, %175, %cst_106 [1, 2] : vector<1x1x256xf32> to vector<1xf32>
    %177 = vector.shape_cast %176 : vector<1xf32> to vector<1x1x1xf32>
    %178 = vector.extract %177[0, 0, 0] : f32 from vector<1x1x1xf32>
    %c0_107 = arith.constant 0 : index
    %c0_108 = arith.constant 0 : index
    %c7 = arith.constant 7 : index
    %c0_109 = arith.constant 0 : index
    %179 = vector.load %arg6[%c0_107, %c0_108, %c7, %c0_109] : memref<1x1x16x128xf32, #tpu.memory_space<vmem>>, vector<1x1x1x128xf32>
    %180 = vector.shape_cast %179 : vector<1x1x1x128xf32> to vector<1x128xf32>
    %181 = vector.broadcast %178 : f32 to vector<1x128xf32>
    %182 = arith.addf %180, %181 : vector<1x128xf32>
    %c0_110 = arith.constant 0 : index
    %c0_111 = arith.constant 0 : index
    %c7_112 = arith.constant 7 : index
    %c0_113 = arith.constant 0 : index
    %183 = vector.load %arg6[%c0_110, %c0_111, %c7_112, %c0_113] : memref<1x1x16x128xf32, #tpu.memory_space<vmem>>, vector<1x1x1x128xf32>
    %184 = vector.shape_cast %183 : vector<1x1x1x128xf32> to vector<1x128xf32>
    %185 = vector.shape_cast %182 : vector<1x128xf32> to vector<1x1x1x128xf32>
    tpu.vector_store %arg6[%c0_110, %c0_111, %c7_112, %c0_113], %185 {strides = array<i32>} : memref<1x1x16x128xf32, #tpu.memory_space<vmem>>, vector<1x1x1x128xf32>,
    return
  }
  func.func @transform_0(%arg0: i32, %arg1: i32, %arg2: i32) -> (i32, i32, i32, i32, i32) {
    %c0_i32 = arith.constant 0 : i32
    %c0_i32_0 = arith.constant 0 : i32
    %c0_i32_1 = arith.constant 0 : i32
    return %arg0, %arg1, %c0_i32, %c0_i32_0, %arg2 : i32, i32, i32, i32, i32
  }
  func.func @transform_1(%arg0: i32, %arg1: i32, %arg2: i32) -> (i32, i32, i32, i32, i32) {
    %c0_i32 = arith.constant 0 : i32
    %c0_i32_0 = arith.constant 0 : i32
    %c0_i32_1 = arith.constant 0 : i32
    return %arg0, %arg1, %c0_i32, %c0_i32_0, %arg2 : i32, i32, i32, i32, i32
  }
  func.func @transform_2(%arg0: i32, %arg1: i32, %arg2: i32) -> (i32, i32, i32, i32) {
    %c0_i32 = arith.constant 0 : i32
    %c0_i32_0 = arith.constant 0 : i32
    return %arg0, %arg1, %c0_i32, %arg2 : i32, i32, i32, i32
  }
  func.func @transform_3(%arg0: i32, %arg1: i32, %arg2: i32) -> (i32, i32, i32, i32) {
    %c0_i32 = arith.constant 0 : i32
    %c0_i32_0 = arith.constant 0 : i32
    %c0_i32_1 = arith.constant 0 : i32
    return %arg0, %arg1, %c0_i32, %c0_i32_0 : i32, i32, i32, i32
  }
}

</mosaic_0001>

<bundles_post_ra>
// kernel: tpu_custom_call.1
= control target key start
LH: loop header
LB: loop body
LE: loop exit
PB: predicated region body
PF: predicated region fallthrough
CT: control target
= control target key end

     0   :  { %8 = vsyncpa [#allocation3], 0  ;;  %s1807_s0 = inlined_call_operand.vmem [shape: f32[1,2,2,4,256], index: 0, kind: input, shape index: {}]   ;;  %s1808_s1 = inlined_call_operand.hbm [shape: f32[1,2,2,4,256], index: 1, kind: input, shape index: {}]   ;;  %s1809_s2 = inlined_call_operand.vmem [shape: f32[1,2,6,256], index: 2, kind: input, shape index: {}]   ;;  %s1810_s3 = inlined_call_operand.hbm [shape: f32[1,2,16,128], index: 3, kind: output, shape index: {}]  }
   0x1   :  { %10 = vsyncpa [#allocation3 + $0x1], 0 }
   0x2   :  { %11 = vsyncpa [#allocation4], 0 }
   0x3   :  { %13 = vsyncpa [#allocation4 + $0x1], 0  ;;  %s1383_s12 = smov 0   ;;  %s1385_s13 = smov 0  }
   0x4   :  { %s1387_s14 = smov 0   ;;  %s1389_s15 = smov 0  }
   0x5   :  { %s1391_s16 = smov 0   ;;  %s1393_s17 = smov 0  }
   0x6 LB: > { %s1130_s18 = sadd.s32 4294967295, %s1353_s17   ;;  %s1131_s19 = sadd.s32 4294967294, %s1353_s17   ;;  %s1353_s17 = sphi %s1393_s17, %s19_s17   ;;  %s1349_s16 = sphi %s1391_s16, %s1823_s16   ;;  %s1345_s15 = sphi %s1389_s15, %s1822_s15   ;;  %s1341_s14 = sphi %s1387_s14, %s1821_s14   ;;  %s1337_s13 = sphi %s1385_s13, %s1820_s13   ;;  %s1333_s12 = sphi %s1383_s12, %s1819_s12  }
   0x7   : > { %s34_s20 = sadd.s32 1, %s1349_s16  ;;  %s79_s21 = sadd.s32 1, %s1341_s14 }
   0x8   : > { %p36_p0 = scmp.ge.s32.totalorder %s34_s20, 2  ;;  %p86_p1 = scmp.ne.s32.totalorder %s1341_s14, %s1337_s13 }
   0x9   : > { %p87_p2 = scmp.eq.s32.totalorder %s1353_s17, 0  ;;  %p92_p3 = scmp.ne.s32.totalorder %s1337_s13, %s1333_s12 }
   0xa   : > { %s1825_s20 = smov (%p36_p0, %s34_s20), 0  ;;  %p93_p5 = scmp.eq.s32.totalorder %s1130_s18, 0 }
   0xb   : > { %p1424_p4 = por %p87_p2, %p86_p1  ;;  %s73_s23 = ssub.s32 %s1349_s16, %s1825_s20 }
   0xc   : > { %p148_p6 = scmp.eq.s32.totalorder %s1130_s18, 1  ;;  %p77_p7 = scmp.eq.s32.totalorder %s73_s23, 0 }
   0xd   : > { %p1430_p8 = por %p93_p5, %p92_p3  ;;  %p154_p10 = scmp.eq.s32.totalorder %s1131_s19, 1 }
   0xe   : > { %p1434_p9 = por %p148_p6, %p86_p1  ;;  %p1187_p13 = scmp.lt.s32.totalorder %s1353_s17, 2 }
   0xf   : > { %s1439_s26 = scalar_select %p77_p7, %s1341_s14, %s79_s21  }
  0x10   : > { %p1441_p11 = por %p154_p10, %p92_p3  ;;  %s191_s28 = sand.u32 1, %s1341_s14  }
  0x11   : > { %s1134_s29 = sshll.u32 %s191_s28, 4  ;;  %s1153_s30 = sshll.u32 %s1349_s16, 8 }
  0x12   : > { %s205_s6 = scalar_lea.hbm %s1808_s1, %s1153_s30  ;;  %s195_s7 = scalar_lea.vmem [#allocation2], %s1134_s29 }
  0x13   : > { %s206_s8 = sshll.u32 %s195_s7, 4  ;;  %p1454_p0 = pnand %p1187_p13, %p1424_p4  ;;  %s207_s8 = int_to_ptr.vmem [resolvable:$true] %s206_s8 }
  0x14   : > { %p1137_p1 = scmp.ge.s32.totalorder %s1353_s17, 1  ;;  %s192_s10 = scalar_lea.sflag [#allocation3], %s191_s28 }
  0x15   : > { %p1247_p2 = pneg %p1454_p0  ;;  %s1258_s11 = scalar_lea.vmem %s207_s8, 256 }
  0x16   : > { %p1259_p3 = scmp.ne.s32.totalorder %s207_s8, %s1258_s11  ;;  %s1355_s18 = smov [#allocation2]  }
  0x17   : > { %s1263_s19 = sshll.u32 %s1355_s18, 4  ;;  %s1264_s19 = int_to_ptr.vmem [resolvable:$false] %s1263_s19 }
  0x18   : > { %p1261_p5 = pnand %p1259_p3, %p1247_p2  ;;  %s1265_s21 = scalar_lea.vmem %s1264_s19, 512 }
  0x19   : > { %p1266_p7 = scmp.lt.s32.totalorder %s207_s8, %s1264_s19  ;;  %p1267_p10 = scmp.lt.s32.totalorder %s1265_s21, %s1258_s11 }
  0x1a   : > { %p1262_p6 = pneg %p1261_p5 }
  0x1b   : > { %p1268_p12 = por %p1267_p10, %p1266_p7 }
  0x1d   : > { %p1269_p4 = pnand %p1268_p12, %p1262_p6 }
  0x1f   : > { %1272 = shalt.err (!%p1269_p4)
}
  0x20   : > { %s1356_s22 = smov 128   ;;  %s1357_s23 = smov 8  }
  0x21   : > { %1182 = dma.hbm_to_vmem [thread:$0]  (!%p1454_p0), %s205_s6, 256, %s207_s8, %s192_s10, %s1356_s22, %s1356_s22, %s1357_s23  }
  0x22   : > { %p231_p13 = scmp.lt.s32.totalorder %s1353_s17, 3 }
  0x24   : > { %p232_p2 = pnand %p1137_p1, %p231_p13 }
  0x25   : > { %s1467_s28 = sand.u32 (!%p232_p2), 1, %s1337_s13  }
  0x26   : > { %235 = sbr.rel (%p232_p2) target bundleno = 333 (0x14d), region = 32  ;;  %s1138_s29 = sshll.u32 (!%p232_p2), %s1467_s28, 4 }
  0x27   : > { %s238_s30 = scalar_lea.sflag (!%p232_p2), [#allocation3], %s1467_s28  ;;  %s241_s4 = scalar_lea.vmem (!%p232_p2), [#allocation2], %s1138_s29 }
  0x2b   : > { %1324 = dma.done.wait (%p1430_p8), %s238_s30, 256  }
  0x2c   : > { %1326 = vsyncadd (%p1430_p8), %s238_s30, 4294967040  ;;  %v346_v0 = vlaneseq  ;;  %p293_p12 = scmp.lt.s32.totalorder %s1345_s15, 1  ;;  %s1479_s6 = scalar_lea.vmem [#allocation5], %s1138_s29  ;;  %v1358_v2 = vmov 0.0   ;;  %vm429_vm0 = vcmask 1043459   ;;  %vm430_vm1 = vcmask 1047559  }
  0x2d   : > { %323 = vst [vmem:[%s1479_s6] sm:$0xff] %v1358_v2  ;;  %324 = vst [vmem:[%s1479_s6 + $0x8] sm:$0xff] %v1358_v2  ;;  %v1500_v6 = vld [vmem:[%s241_s4] sm:$0xff]  ;;  %v1502_v7 = vld [vmem:[%s241_s4 + $0x8] sm:$0xff]  ;;  %vm366_vm3 = vcmask 1040384   ;;  %vm553_vm6 = vcmask 1042432   ;;  %vm765_vm9 = vcmask 1041409  }
  0x2e   : > { %v347_v1 = vshrl.u32 %v346_v0, 7  ;;  %s1477_s5 = scalar_select %p293_p12, %s1345_s15, 1  ;;  %vm1496_vm2 = vmor %vm430_vm1, %vm429_vm0 }
  0x2f   : > { %v432_v14 = vsel %vm1496_vm2, %v1500_v6, -inf  ;;  %v433_v15 = vsel %vm1496_vm2, %v1502_v7, -inf }
  0x30   : > { %v1485_v3 = vsub.s32 3, %v347_v1  ;;  %v1487_v4 = vsub.s32 7, %v347_v1  ;;  %s1154_s24 = sshll.u32 %s1477_s5, 4  ;;  %v434_v28 = vmax.f32 %v432_v14, %v433_v15  ;;  %s1156_s5 = sshll.u32 %s1345_s15, 8 }
  0x31   : > { %s302_s9 = scalar_lea.vmem %s1807_s0, %s1154_s24  ;;  %s317_s18 = scalar_lea.vmem %s1809_s2, %s1154_s24 }
  0x32   : > { %v1506_v8 = vrot.slane %v1500_v6, %v1485_v3  ;;  %v1510_v9 = vrot.slane %v1500_v6, %v1487_v4  ;;  %v1514_v10 = vrot.slane %v1502_v7, %v1485_v3  ;;  %v1518_v11 = vrot.slane %v1502_v7, %v1487_v4  ;;  %v1520_v12 = vld [vmem:[%s302_s9] sm:$0xff]  ;;  %v1522_v13 = vld [vmem:[%s302_s9 + $0x8] sm:$0xff]  ;;  %s990_s24 = sshll.u32 %s1479_s6, 4  ;;  %s1755_s11 = scalar_lea.hbm %s1810_s3, %s1156_s5  ;;  %s1757_s24 = int_to_ptr.vmem [resolvable:$true] %s990_s24 }
  0x33   : > { %v435_v16 = vsel %vm1496_vm2, %v1520_v12, -inf  ;;  %v436_v17 = vsel %vm1496_vm2, %v1522_v13, -inf  ;;  %v340_v31 = vsub.f32 %v1520_v12, %v1500_v6  ;;  %v341_v32 = vsub.f32 %v1522_v13, %v1502_v7  ;;  %s975_s15 = scalar_lea.sflag [#allocation4], %s1467_s28 }
  0x34   : > { %v524_v18 = vrot.slane %v1510_v9, %v1485_v3  ;;  %v528_v19 = vrot.slane %v1514_v10, %v1485_v3  ;;  %v532_v20 = vrot.slane %v1518_v11, %v1485_v3  ;;  %v786_v21 = vsel %vm429_vm0, %v1506_v8, inf }
  0x35   : > { %v787_v22 = vsel %vm429_vm0, %v1510_v9, inf  ;;  %v788_v23 = vsel %vm429_vm0, %v1514_v10, inf  ;;  %v789_v24 = vsel %vm429_vm0, %v1518_v11, inf  ;;  %v520_v25 = vrot.slane %v1506_v8, %v1485_v3 }
  0x36   : > { %v790_v26 = vmin.f32 %v786_v21, %v787_v22  ;;  %v791_v27 = vmin.f32 %v788_v23, %v789_v24  ;;  %v437_v29 = vmax.f32 %v435_v16, %v436_v17  ;;  %v1558_v33 = vadd.f32 %v1500_v6, %v1520_v12 }
  0x37   : > { %v537_v30 = vcombine.low %v520_v25, %v524_v18  ;;  %v1562_v37 = vadd.f32 %v1502_v7, %v1522_v13  ;;  %v342_v38 = vand.u32 2147483647, %v340_v31  ;;  %v343_v39 = vand.u32 2147483647, %v341_v32 }
  0x38   : > { %v792_v34 = vmin.f32 %v790_v26, %v791_v27  ;;  %v438_v35 = vmul.f32 %v437_v29, %v434_v28  ;;  %v466_v36 = vadd.f32 %v437_v29, %v434_v28  ;;  %vm334_vm4 = vcmp.gt.f32.partialorder %v1558_v33, 0.0 }
  0x39   : > { %v538_v40 = vcombine.low %v528_v19, %v532_v20  ;;  %vm335_vm5 = vcmp.gt.f32.partialorder %v1562_v37, 0.0  ;;  %v349_v44 = vrot.slane %v342_v38, %v1485_v3  ;;  %v353_v45 = vrot.slane %v342_v38, %v1487_v4  ;;  %v1620_v38 = vld [vmem:[%s317_s18 + $0x8] sm:$0x3f] }
  0x3a   : > { %793 = vmin.xlane.f32.xlu0 %v792_v34  ;;  %v443_v41 = vrot.slane %v438_v35, %v1485_v3  ;;  %v447_v42 = vrot.slane %v438_v35, %v1487_v4  ;;  %v467_v43 = vsub.f32 %v466_v36, %v438_v35  ;;  %v357_v46 = vrot.slane %v343_v39, %v1485_v3  ;;  %v1618_v36 = vld [vmem:[%s317_s18] sm:$0x3f]  ;;  %s1273_s18 = scalar_lea.vmem %s1757_s24, 256 }
  0x3b   : > { %v361_v47 = vrot.slane %v343_v39, %v1487_v4  ;;  %v367_v53 = vsel %vm366_vm3, %v349_v44, 0.0  ;;  %v368_v54 = vsel %vm366_vm3, %v353_v45, 0.0  ;;  %v1144_v61 = vsel %vm334_vm4, 1.0, %v1358_v2  ;;  %p1274_p8 = scmp.ne.s32.totalorder %s1757_s24, %s1273_s18 }
  0x3c   : > { %v450_v48 = vsel %vm366_vm3, %v443_v41, 0.0  ;;  %v451_v49 = vsel %vm366_vm3, %v447_v42, 0.0  ;;  %v472_v50 = vrot.slane %v467_v43, %v1485_v3  ;;  %v476_v51 = vrot.slane %v467_v43, %v1487_v4 }
  0x3d   : > { %v452_v52 = vadd.f32 %v451_v49, %v450_v48  ;;  %v370_v55 = vsel %vm366_vm3, %v357_v46, 0.0  ;;  %v369_v56 = vadd.f32 %v368_v54, %v367_v53  ;;  %v372_v57 = vsel %vm366_vm3, %v361_v47, 0.0  ;;  %p1275_p0 = pnand %p1274_p8, %p1434_p9 }
  0x3e   : > { %v479_v58 = vsel %vm366_vm3, %v472_v50, 0.0  ;;  %v480_v59 = vsel %vm366_vm3, %v476_v51, 0.0  ;;  %v1145_v62 = vsel %vm335_vm5, 1.0, %v1358_v2  ;;  %v1589_v63 = vmul.f32 %v537_v30, %v1500_v6 }
  0x3f   : > { %453 = vadd.xlane.f32.xlu1 %v452_v52  ;;  %v481_v60 = vadd.f32 %v480_v59, %v479_v58  ;;  %v371_v0 = vadd.f32 %v370_v55, %v369_v56  ;;  %v392_v1 = vrot.slane %v1144_v61, %v1485_v3  ;;  %v396_v5 = vrot.slane %v1144_v61, %v1487_v4  ;;  %p1276_p1 = pneg %p1275_p0 }
  0x40   : > { %v400_v14 = vrot.slane %v1145_v62, %v1485_v3  ;;  %v404_v15 = vrot.slane %v1145_v62, %v1487_v4  ;;  %v1596_v16 = vmul.f32 %v538_v40, %v1502_v7  ;;  %v543_v17 = vsub.f32 %v1520_v12, %v1589_v63 }
  0x41   : > { %v574_v18 = vsub.f32 1.0, %v1520_v12  ;;  %v373_v19 = vadd.f32 %v372_v57, %v371_v0  ;;  %v409_v20 = vsel %vm366_vm3, %v392_v1, 0.0  ;;  %v410_v21 = vsel %vm366_vm3, %v396_v5, 0.0 }
  0x42   : > { %v412_v22 = vsel %vm366_vm3, %v400_v14, 0.0  ;;  %v411_v23 = vadd.f32 %v410_v21, %v409_v20  ;;  %v414_v24 = vsel %vm366_vm3, %v404_v15, 0.0  ;;  %v544_v25 = vsub.f32 %v1522_v13, %v1596_v16 }
  0x43   : > { %482 = vadd.xlane.f32.xlu1 %v481_v60  ;;  %v545_v26 = vand.u32 2147483647, %v543_v17  ;;  %374 = vadd.xlane.f32.xlu0 %v373_v19  ;;  %v575_v27 = vsub.f32 1.0, %v1522_v13  ;;  %v581_v28 = vrot.slane %v574_v18, %v1485_v3  ;;  %v585_v29 = vrot.slane %v574_v18, %v1487_v4 }
  0x44   : > { %v620_v30 = vcombine.high %v1520_v12, %v1520_v12  ;;  %v413_v31 = vadd.f32 %v412_v22, %v411_v23  ;;  %v546_v32 = vand.u32 2147483647, %v544_v25  ;;  %v621_v53 = vcombine.high %v1522_v13, %v1522_v13 }
  0x45   : > { %v549_v34 = vcombine.high %v545_v26, %v545_v26  ;;  %v554_v35 = vsel %vm553_vm6, %v545_v26, 0.0  ;;  %v589_v39 = vrot.slane %v575_v27, %v1485_v3  ;;  %v593_v40 = vrot.slane %v575_v27, %v1487_v4 }
  0x46   : > { %v601_v41 = vrot.slane %v581_v28, %v1485_v3  ;;  %v605_v42 = vrot.slane %v585_v29, %v1485_v3  ;;  %v415_v43 = vadd.f32 %v414_v24, %v413_v31  ;;  %v550_v44 = vcombine.high %v546_v32, %v546_v32 }
  0x47   : > { %v555_v45 = vsel %vm553_vm6, %v549_v34, 0.0  ;;  %v557_v46 = vsel %vm553_vm6, %v546_v32, 0.0  ;;  %v609_v48 = vrot.slane %v589_v39, %v1485_v3  ;;  %v613_v49 = vrot.slane %v593_v40, %v1485_v3 }
  0x48   : > { %v556_v47 = vadd.f32 %v555_v45, %v554_v35  ;;  %v614_v50 = vmul.f32 %v601_v41, %v1618_v36  ;;  %416 = vadd.xlane.f32.xlu0 %v415_v43  ;;  %v559_v51 = vsel %vm553_vm6, %v550_v44, 0.0  ;;  %v615_v52 = vmul.f32 %v605_v42, %v1620_v38 }
  0x49   : > { %v622_v54 = vrot.slane %v1520_v12, 5  ;;  %v616_v56 = vmul.f32 %v609_v48, %v1618_v36  ;;  %v617_v57 = vmul.f32 %v613_v49, %v1620_v38  ;;  %v623_v58 = vrot.slane %v620_v30, 5 }
  0x4a   : > { %v558_v55 = vadd.f32 %v557_v46, %v556_v47  ;;  %v624_v59 = vrot.slane %v1522_v13, 5  ;;  %v625_v60 = vrot.slane %v621_v53, 5  ;;  %v636_v62 = vcombine.high %v1589_v63, %v1589_v63 }
  0x4b   : > { %v630_v61 = vadd.f32 %v622_v54, %v614_v50  ;;  %v631_v1 = vadd.f32 %v623_v58, %v615_v52  ;;  %v637_v5 = vcombine.high %v1596_v16, %v1596_v16  ;;  %v638_v14 = vrot.slane %v1589_v63, 5 }
  0x4c   : > { %v560_v0 = vadd.f32 %v559_v51, %v558_v55  ;;  %v632_v15 = vadd.f32 %v624_v59, %v616_v56  ;;  %v633_v17 = vadd.f32 %v625_v60, %v617_v57  ;;  %v639_v18 = vrot.slane %v636_v62, 5 }
  0x4d   : > { %v640_v19 = vrot.slane %v1596_v16, 5  ;;  %v641_v20 = vrot.slane %v637_v5, 5  ;;  %v646_v21 = vsub.f32 %v630_v61, %v638_v14  ;;  %v894_v22 = vsel %vm429_vm0, %v1506_v8, 0.0 }
  0x4e   : > { %561 = vadd.xlane.f32.xlu0 %v560_v0  ;;  %v895_v23 = vsel %vm429_vm0, %v1514_v10, 0.0  ;;  %v647_v24 = vsub.f32 %v631_v1, %v639_v18  ;;  %v897_v63 = vsel %vm429_vm0, %v1510_v9, 0.0  ;;  %v898_v16 = vsel %vm429_vm0, %v1518_v11, 0.0 }
  0x4f   : > { %v648_v25 = vsub.f32 %v632_v15, %v640_v19  ;;  %v896_v26 = vadd.f32 %v895_v23, %v894_v22  ;;  %v649_v27 = vsub.f32 %v633_v17, %v641_v20  ;;  %v650_v28 = vand.u32 2147483647, %v646_v21 }
  0x50   : > { %v808_v29 = vrot.slane %v1520_v12, %v1485_v3  ;;  %v651_v30 = vand.u32 2147483647, %v647_v24  ;;  %v899_v8 = vadd.f32 %v898_v16, %v897_v63  ;;  %v812_v35 = vrot.slane %v1520_v12, %v1487_v4 }
  0x51   : > { %v652_v31 = vand.u32 2147483647, %v648_v25  ;;  %v900_v32 = vmul.f32 0.5, %v896_v26  ;;  %v653_v34 = vand.u32 2147483647, %v649_v27  ;;  %v658_v10 = vrot.slane %v650_v28, 3 }
  0x52   : > { %v816_v9 = vrot.slane %v1522_v13, %v1485_v3  ;;  %v659_v39 = vrot.slane %v651_v30, 3  ;;  %v901_v41 = vmul.f32 0.5, %v899_v8  ;;  %v820_v44 = vrot.slane %v1522_v13, %v1487_v4 }
  0x53   : > { %v660_v40 = vrot.slane %v652_v31, 3  ;;  %vm902_vm7 = vcmp.gt.f32.partialorder %v900_v32, 0.05  ;;  %v661_v11 = vrot.slane %v653_v34, 3  ;;  %v666_v42 = vsel %vm553_vm6, %v658_v10, 0.0 }
  0x54   : > { %v1146_v43 = vsel %vm902_vm7, 1.0, %v1358_v2  ;;  %v667_v45 = vsel %vm553_vm6, %v659_v39, 0.0  ;;  %vm903_vm8 = vcmp.gt.f32.partialorder %v901_v41, 0.05  ;;  %v828_v54 = vrot.slane %v808_v29, %v1485_v3 }
  0x55   : > { %v669_v46 = vsel %vm553_vm6, %v660_v40, 0.0  ;;  %v1666_v47 = vrot.slane %v1146_v43, %v1485_v3  ;;  %v668_v48 = vadd.f32 %v667_v45, %v666_v42  ;;  %v671_v49 = vsel %vm553_vm6, %v661_v11, 0.0 }
  0x56   : > { %v1147_v50 = vsel %vm903_vm8, 1.0, %v1358_v2  ;;  %v954_v51 = vrot.slane %v1146_v43, 3  ;;  %v832_v55 = vrot.slane %v812_v35, %v1485_v3  ;;  %v836_v58 = vrot.slane %v816_v9, %v1485_v3 }
  0x57   : > { %v1671_v52 = vrot.slane %v1147_v50, %v1485_v3  ;;  %v955_v53 = vrot.slane %v1147_v50, 3  ;;  %v670_v56 = vadd.f32 %v669_v46, %v668_v48  ;;  %v840_v59 = vrot.slane %v820_v44, %v1485_v3 }
  0x58   : > { %v958_v57 = vsel %vm366_vm3, %v954_v51, 0.0  ;;  %v845_v61 = vcombine.low %v828_v54, %v832_v55  ;;  %v866_v2 = vsel %vm429_vm0, %v808_v29, 0.0  ;;  %v867_v62 = vsel %vm429_vm0, %v816_v9, 0.0 }
  0x59   : > { %v959_v60 = vsel %vm366_vm3, %v955_v53, 0.0  ;;  %v672_v0 = vadd.f32 %v671_v49, %v670_v56  ;;  %v846_v5 = vcombine.low %v836_v58, %v840_v59  ;;  %v868_v14 = vadd.f32 %v867_v62, %v866_v2 }
  0x5a   : > { %v960_v1 = vadd.f32 %v959_v60, %v958_v57  ;;  %v849_v15 = vmul.f32 %v845_v61, %v1520_v12  ;;  %v869_v17 = vsel %vm429_vm0, %v812_v35, 0.0  ;;  %v870_v18 = vsel %vm429_vm0, %v820_v44, 0.0 }
  0x5b   : > { %v918_v19 = vmul.f32 %v1666_v47, %v1618_v36  ;;  %673 = vadd.xlane.f32.xlu1 %v672_v0  ;;  %v850_v20 = vmul.f32 %v846_v5, %v1522_v13  ;;  %v871_v21 = vadd.f32 %v870_v18, %v869_v17  ;;  %v872_v22 = vmul.f32 0.5, %v868_v14 }
  0x5c   : > { %961 = vadd.xlane.f32.xlu0 %v960_v1  ;;  %v853_v23 = vcombine.high %v849_v15, %v849_v15  ;;  %v857_v24 = vsel %vm553_vm6, %v849_v15, 0.0  ;;  %v919_v25 = vmul.f32 %v1671_v52, %v1620_v38  ;;  %v686_v26 = vmul.f32 %v1500_v6, %v1520_v12 }
  0x5d   : > { %v854_v63 = vcombine.high %v850_v20, %v850_v20  ;;  %v858_v27 = vsel %vm553_vm6, %v850_v20, 0.0  ;;  %v873_v28 = vmul.f32 0.5, %v871_v21  ;;  %v874_v16 = vsub.f32 1.0, %v872_v22 }
  0x5e   : > { %v859_v29 = vadd.f32 %v858_v27, %v857_v24  ;;  %v860_v30 = vsel %vm553_vm6, %v853_v23, 0.0  ;;  %v922_v31 = vrot.slane %v918_v19, 5  ;;  %v693_v8 = vrot.slane %v686_v26, %v1485_v3 }
  0x5f   : > { %v861_v32 = vsel %vm553_vm6, %v854_v63, 0.0  ;;  %v875_v34 = vsub.f32 1.0, %v873_v28  ;;  %v879_v10 = vrot.slane %v874_v16, %v1485_v3  ;;  %v697_v35 = vrot.slane %v686_v26, %v1487_v4 }
  0x60   : > { %v862_v9 = vadd.f32 %v861_v32, %v860_v30  ;;  %v864_v6 = vmul.f32 0.5, %v859_v29  ;;  %v710_v12 = vsel %vm429_vm0, %v693_v8, 0.0  ;;  %v687_v39 = vmul.f32 %v1502_v7, %v1522_v13 }
  0x61   : > { %v883_v40 = vrot.slane %v875_v34, %v1485_v3  ;;  %v884_v41 = vmul.f32 %v879_v10, %v1618_v36  ;;  %v711_v11 = vsel %vm429_vm0, %v697_v35, 0.0  ;;  %v720_v42 = vsub.f32 %v1558_v33, %v686_v26 }
  0x62   : > { %v865_v43 = vmul.f32 0.5, %v862_v9  ;;  %v888_v44 = vrot.slane %v864_v6, 5  ;;  %v712_v45 = vadd.f32 %v711_v11, %v710_v12  ;;  %v701_v46 = vrot.slane %v687_v39, %v1485_v3 }
  0x63   : > { %v885_v48 = vmul.f32 %v883_v40, %v1620_v38  ;;  %v705_v49 = vrot.slane %v687_v39, %v1487_v4  ;;  %v727_v50 = vrot.slane %v720_v42, %v1485_v3  ;;  %v731_v7 = vrot.slane %v720_v42, %v1487_v4 }
  0x64   : > { %v889_v13 = vrot.slane %v865_v43, 5  ;;  %v892_v51 = vadd.f32 %v888_v44, %v884_v41  ;;  %v715_v36 = vsel %vm429_vm0, %v701_v46, 0.0  ;;  %v721_v53 = vsub.f32 %v1562_v37, %v687_v39 }
  0x65   : > { %v923_v33 = vrot.slane %v919_v25, 5  ;;  %v716_v54 = vsel %vm429_vm0, %v705_v49, 0.0  ;;  %v744_v55 = vsel %vm429_vm0, %v727_v50, 0.0  ;;  %v745_v56 = vsel %vm429_vm0, %v731_v7, 0.0 }
  0x66   : > { %v893_v38 = vadd.f32 %v889_v13, %v885_v48  ;;  %v916_v57 = vmul.f32 %v1666_v47, %v892_v51  ;;  %v717_v58 = vadd.f32 %v716_v54, %v715_v36  ;;  %v746_v59 = vadd.f32 %v745_v56, %v744_v55 }
  0x67   : > { %v735_v60 = vrot.slane %v721_v53, %v1485_v3  ;;  %v739_v61 = vrot.slane %v721_v53, %v1487_v4 }
  0x68   : > { %v917_v2 = vmul.f32 %v1671_v52, %v893_v38  ;;  %v926_v62 = vsub.f32 %v916_v57, %v922_v31  ;;  %718 = vadd.xlane.f32.xlu0 %v717_v58  ;;  %v1359_v52 = vmov inf  }
  0x69   : > { %v749_v37 = vsel %vm429_vm0, %v735_v60, 0.0  ;;  %v750_v0 = vsel %vm429_vm0, %v739_v61, 0.0  ;;  %325 = vst [vmem:[%s1479_s6 + $0x8] sm:$0x1] %v1359_v52 }
  0x6a   : > { %v927_v1 = vsub.f32 %v917_v2, %v923_v33  ;;  %v928_v5 = vand.u32 2147483647, %v926_v62  ;;  %v751_v14 = vadd.f32 %v750_v0, %v749_v37 }
  0x6c   : > { %v929_v15 = vand.u32 2147483647, %v927_v1  ;;  %v932_v47 = vrot.slane %v928_v5, 3  ;;  %752 = vadd.xlane.f32.xlu0 %v751_v14 }
  0x6e   : > { %v933_v17 = vrot.slane %v929_v15, 3  ;;  %v936_v18 = vsel %vm553_vm6, %v932_v47, 0.0 }
  0x70   : > { %v937_v4 = vsel %vm553_vm6, %v933_v17, 0.0 }
  0x71   : > { %v938_v19 = vadd.f32 %v937_v4, %v936_v18 }
  0x73   : > { %939 = vadd.xlane.f32.xlu1 %v938_v19 }
  0x77   : > { %713 = vadd.xlane.f32.xlu1 %v712_v45 }
  0x7b   : > { %747 = vadd.xlane.f32.xlu1 %v746_v59 }
  0xc3   : > { %v794_v20 = vpop.xlane.xlu0 %793 }
  0xc4   : > { %v795_v46 = vrot.slane %v794_v20, 4 }
  0xc6   : > { %v796_v51 = vmin.f32 %v794_v20, %v795_v46  ;;  %v754_v20 = vld [vmem:[%s1479_s6 + $0x9] sm:$0x3] }
  0xc8   : > { %v454_v21 = vpop.xlane.xlu1 %453  ;;  %v797_v53 = vrot.slane %v796_v51, 2 }
  0xc9   : > { %v455_v22 = vrot.slane %v454_v21, 4 }
  0xca   : > { %v798_v56 = vmin.f32 %v796_v51, %v797_v53 }
  0xcb   : > { %v456_v26 = vadd.f32 %v455_v22, %v454_v21 }
  0xcc   : > { %v483_v23 = vpop.xlane.xlu1 %482  ;;  %v375_v24 = vpop.xlane.xlu0 %374  ;;  %v799_v58 = vrot.slane %v798_v56, 1 }
  0xcd   : > { %v484_v25 = vrot.slane %v483_v23, 4  ;;  %v376_v63 = vrot.slane %v375_v24, 4  ;;  %v457_v29 = vrot.slane %v456_v26, 2 }
  0xce   : > { %v800_v61 = vmin.f32 %v798_v56, %v799_v58 }
  0xcf   : > { %v485_v27 = vadd.f32 %v484_v25, %v483_v23  ;;  %v377_v28 = vadd.f32 %v376_v63, %v375_v24  ;;  %v458_v9 = vadd.f32 %v457_v29, %v456_v26 }
  0xd1   : > { %v486_v16 = vrot.slane %v485_v27, 2  ;;  %v378_v30 = vrot.slane %v377_v28, 2  ;;  %v417_v31 = vpop.xlane.xlu0 %416  ;;  %v459_v43 = vrot.slane %v458_v9, 1 }
  0xd2   : > { %v418_v8 = vrot.slane %v417_v31, 4 }
  0xd3   : > { %v379_v32 = vadd.f32 %v378_v30, %v377_v28  ;;  %v487_v10 = vadd.f32 %v486_v16, %v485_v27  ;;  %v460_v50 = vadd.f32 %v459_v43, %v458_v9  ;;  %v770_v28 = vld [vmem:[%s1479_s6 + $0xb] sm:$0x3]  ;;  %v491_v9 = vld [vmem:[%s1479_s6 + $0x3] sm:$0x1] }
  0xd4   : > { %v419_v34 = vadd.f32 %v418_v8, %v417_v31  ;;  %v383_v8 = vld [vmem:[%s1479_s6] sm:$0x1] }
  0xd5   : > { %v380_v35 = vrot.slane %v379_v32, 1  ;;  %v488_v11 = vrot.slane %v487_v10, 1 }
  0xd6   : > { %v420_v6 = vrot.slane %v419_v34, 2 }
  0xd7   : > { %v562_v12 = vpop.xlane.xlu0 %561  ;;  %v381_v40 = vadd.f32 %v380_v35, %v379_v32  ;;  %v489_v49 = vadd.f32 %v488_v11, %v487_v10  ;;  %v462_v10 = vld [vmem:[%s1479_s6 + $0x2] sm:$0x1]  ;;  %v570_v11 = vld [vmem:[%s1479_s6 + $0x4] sm:$0x1] }
  0xd8   : > { %v563_v39 = vrot.slane %v562_v12, 4  ;;  %v421_v41 = vadd.f32 %v420_v6, %v419_v34 }
  0xd9   : > { %1157 = vpush %v381_v40 }
  0xda   : > { %v564_v42 = vadd.f32 %v563_v39, %v562_v12  ;;  %v422_v44 = vrot.slane %v421_v41, 1 }
  0xdc   : > { %v565_v45 = vrot.slane %v564_v42, 2  ;;  %v423_v48 = vadd.f32 %v422_v44, %v421_v41  ;;  %v682_v44 = vld [vmem:[%s1479_s6 + $0x5] sm:$0x1] }
  0xde   : > { %v566_v7 = vadd.f32 %v565_v45, %v564_v42  ;;  %1159 = vpush %v423_v48  ;;  %v785_v45 = vld [vmem:[%s1479_s6 + $0x8] sm:$0x1] }
  0xdf   : > { %1161 = vpush %v460_v50 }
  0xe0   : > { %v567_v13 = vrot.slane %v566_v7, 1  ;;  %1163 = vpush %v489_v49 }
  0xe2   : > { %v568_v36 = vadd.f32 %v567_v13, %v566_v7  ;;  %v948_v7 = vld [vmem:[%s1479_s6 + $0x6] sm:$0x1]  ;;  %v970_v13 = vld [vmem:[%s1479_s6 + $0x7] sm:$0x1] }
  0xe4   : > { %1165 = vpush %v568_v36  ;;  %v674_v33 = vpop.xlane.xlu1 %673 }
  0xe5   : > { %v675_v54 = vrot.slane %v674_v33, 4  ;;  %v962_v2 = vpop.xlane.xlu0 %961 }
  0xe6   : > { %v963_v62 = vrot.slane %v962_v2, 4 }
  0xe7   : > { %v676_v55 = vadd.f32 %v675_v54, %v674_v33 }
  0xe8   : > { %v964_v37 = vadd.f32 %v963_v62, %v962_v2 }
  0xe9   : > { %v677_v38 = vrot.slane %v676_v55, 2 }
  0xea   : > { %v965_v1 = vrot.slane %v964_v37, 2 }
  0xeb   : > { %v678_v57 = vadd.f32 %v677_v38, %v676_v55 }
  0xec   : > { %v966_v17 = vadd.f32 %v965_v1, %v964_v37 }
  0xed   : > { %v679_v59 = vrot.slane %v678_v57, 1 }
  0xee   : > { %v967_v24 = vrot.slane %v966_v17, 1 }
  0xef   : > { %v680_v60 = vadd.f32 %v679_v59, %v678_v57 }
  0xf0   : > { %v968_v30 = vadd.f32 %v967_v24, %v966_v17 }
  0xf1   : > { %1167 = vpush %v680_v60  ;;  %v719_v0 = vpop.xlane.xlu0 %718 }
  0xf2   : > { %1169 = vpush %v800_v61  ;;  %v762_v47 = vrot.slane %v719_v0, %v1485_v3 }
  0xf5   : > { %v753_v4 = vpop.xlane.xlu0 %752 }
  0xf6   : > { %v778_v23 = vrot.slane %v753_v4, %v1485_v3 }
  0xfc   : > { %v940_v5 = vpop.xlane.xlu1 %939 }
  0xfd   : > { %v941_v14 = vrot.slane %v940_v5, 4 }
  0xff   : > { %v942_v15 = vadd.f32 %v941_v14, %v940_v5 }
 0x100   : > { %v714_v18 = vpop.xlane.xlu1 %713 }
 0x101   : > { %v943_v19 = vrot.slane %v942_v15, 2  ;;  %v758_v52 = vrot.slane %v714_v18, %v1485_v3 }
 0x103   : > { %v944_v21 = vadd.f32 %v943_v19, %v942_v15  ;;  %v766_v22 = vsel %vm765_vm9, %v762_v47, %v758_v52 }
 0x104   : > { %v768_v25 = vadd.f32 %v766_v22, %v754_v20  ;;  %v748_v26 = vpop.xlane.xlu1 %747 }
 0x105   : > { %v945_v63 = vrot.slane %v944_v21, 1  ;;  %v774_v27 = vrot.slane %v748_v26, %v1485_v3  ;;  %v425_v3 = vld [vmem:[%s1479_s6 + $0x1] sm:$0x1] }
 0x106   : > { %769 = vst [vmem:[%s1479_s6 + $0x9] sm:$0x3] %v768_v25 }
 0x107   : > { %v946_v16 = vadd.f32 %v945_v63, %v944_v21  ;;  %v781_v29 = vsel %vm765_vm9, %v778_v23, %v774_v27 }
 0x108   : > { %v783_v31 = vadd.f32 %v781_v29, %v770_v28 }
 0x109   : > { %1171 = vpush %v946_v16 }
 0x10a   : > { %1173 = vpush %v968_v30  ;;  %s1158_s19 = spop %1157  ;;  %784 = vst [vmem:[%s1479_s6 + $0xb] sm:$0x3] %v783_v31 }
 0x10b   : > { %v384_v32 = vstv %s1158_s19  ;;  %s1360_s19 = smov [#allocation5]  }
 0x10c   : > { %v385_v34 = vadd.f32 %v384_v32, %v383_v8 }
 0x10e   : > { %386 = vst [vmem:[%s1479_s6] sm:$0x1] %v385_v34 }
 0x10f   : > { %s1160_s21 = spop %1159 }
 0x110   : > { %v426_v35 = vstv %s1160_s21  ;;  %s1162_s22 = spop %1161  ;;  %s1277_s21 = sshll.u32 %s1360_s19, 4  ;;  %s1278_s21 = int_to_ptr.vmem [resolvable:$false] %s1277_s21 }
 0x111   : > { %v427_v6 = vadd.f32 %v426_v35, %v425_v3  ;;  %v463_v12 = vstv %s1162_s22  ;;  %s1164_s23 = spop %1163  ;;  %s1279_s22 = scalar_lea.vmem %s1278_s21, 512 }
 0x112   : > { %v464_v39 = vadd.f32 %v463_v12, %v462_v10  ;;  %v492_v40 = vstv %s1164_s23  ;;  %p1280_p3 = scmp.lt.s32.totalorder %s1757_s24, %s1278_s21  ;;  %p1281_p5 = scmp.lt.s32.totalorder %s1279_s22, %s1273_s18 }
 0x113   : > { %428 = vst [vmem:[%s1479_s6 + $0x1] sm:$0x1] %v427_v6  ;;  %v493_v41 = vadd.f32 %v492_v40, %v491_v9 }
 0x114   : > { %465 = vst [vmem:[%s1479_s6 + $0x2] sm:$0x1] %v464_v39  ;;  %p1282_p6 = por %p1281_p5, %p1280_p3 }
 0x115   : > { %s1166_s29 = spop %1165  ;;  %494 = vst [vmem:[%s1479_s6 + $0x3] sm:$0x1] %v493_v41 }
 0x116   : > { %v571_v42 = vstv %s1166_s29  ;;  %p1283_p7 = pnand %p1282_p6, %p1276_p1 }
 0x117   : > { %v572_v43 = vadd.f32 %v571_v42, %v570_v11 }
 0x119   : > { %573 = vst [vmem:[%s1479_s6 + $0x4] sm:$0x1] %v572_v43 }
 0x122   : > { %s1168_s30 = spop %1167 }
 0x123   : > { %v683_v46 = vstv %s1168_s30  ;;  %s1170_s4 = spop %1169 }
 0x124   : > { %v684_v48 = vadd.f32 %v683_v46, %v682_v44  ;;  %v802_v49 = vstv %s1170_s4 }
 0x125   : > { %v803_v50 = vmin.f32 %v785_v45, %v802_v49 }
 0x126   : > { %685 = vst [vmem:[%s1479_s6 + $0x5] sm:$0x1] %v684_v48 }
 0x127   : > { %804 = vst [vmem:[%s1479_s6 + $0x8] sm:$0x1] %v803_v50 }
 0x13a   : > { %s1172_s7 = spop %1171 }
 0x13b   : > { %v949_v51 = vstv %s1172_s7  ;;  %s1174_s8 = spop %1173 }
 0x13c   : > { %v950_v36 = vadd.f32 %v949_v51, %v948_v7  ;;  %v971_v53 = vstv %s1174_s8 }
 0x13d   : > { %v972_v33 = vadd.f32 %v971_v53, %v970_v13 }
 0x13e   : > { %951 = vst [vmem:[%s1479_s6 + $0x6] sm:$0x1] %v950_v36 }
 0x13f   : > { %973 = vst [vmem:[%s1479_s6 + $0x7] sm:$0x1] %v972_v33 }
 0x140   : > { %1286 = shalt.err (!%p1283_p7)
}
 0x141   : > { %s1287_s6 = scalar_lea.hbm %s1755_s11, 256  ;;  %s1291_s30 = scalar_lea.hbm %s1810_s3, 512 }
 0x142   : > { %p1288_p10 = scmp.ne.s32.totalorder %s1755_s11, %s1287_s6  ;;  %p1292_p2 = scmp.lt.s32.totalorder %s1755_s11, %s1810_s3 }
 0x143   : > { %p1293_p12 = scmp.lt.s32.totalorder %s1291_s30, %s1287_s6 }
 0x144   : > { %p1289_p4 = pnand %p1288_p10, %p1434_p9 }
 0x145   : > { %p1294_p8 = por %p1293_p12, %p1292_p2 }
 0x146   : > { %p1290_p13 = pneg %p1289_p4 }
 0x148   : > { %p1295_p0 = pnand %p1294_p8, %p1290_p13 }
 0x14a   : > { %1298 = shalt.err (!%p1295_p0)
}
 0x14b   : > { %s1361_s7 = smov 128   ;;  %s1362_s8 = smov 8  }
 0x14c   : > { %1177 = dma.vmem_to_hbm [thread:$0]  (%p1434_p9), %s1757_s24, 256, %s1755_s11, %s975_s15, %s1361_s7, %s1361_s7, %s1362_s8  }
 0x14d PF: > { %s1005_s9 = sand.u32 1, %s1333_s12   ;;  %p1818_p1 = scmp.ge.s32.totalorder %s1353_s17, 2 }
 0x14e   : > { %s1006_s10 = scalar_lea.sflag [#allocation4], %s1005_s9 }
 0x14f   : > { %p1184_p3 = pnand %p1818_p1, %p1441_p11 }
 0x151   : > { %p1185_p5 = pneg %p1184_p3 }
 0x153   : > { %1328 = dma.done.wait (%p1185_p5), %s1006_s10, 256  }
 0x154   : > { %1330 = vsyncadd (%p1185_p5), %s1006_s10, 4294967040  ;;  %s19_s17 = sadd.s32 1, %s1353_s17   ;;  %s1819_s12 = smov %s1337_s13 }
 0x155   : > { %p16_p6 = scmp.ge.s32.totalorder %s19_s17, 4   ;;  %s1820_s13 = smov %s1341_s14 }
 0x156   : > { %s1821_s14 = smov %s1439_s26  ;;  %s1822_s15 = smov %s1349_s16 }
 0x157   : > { %s1823_s16 = smov %s1825_s20  ;;  %18 = sbr.rel (!%p16_p6) target bundleno = 6 (0x6), region = 87 }
 0x15c   :  { %1011 = vsyncpa [#allocation3], 1 }
 0x15d   :  { %1013 = vsyncpa [#allocation3 + $0x1], 1 }
 0x15e   :  { %1014 = vsyncpa [#allocation4], 1 }
 0x15f   :  { %1016 = vsyncpa [#allocation4 + $0x1], 1 }

</bundles_post_ra>
